<compile_context>
chip_gen: v7x
topology: tpu7x:2x2x1
jax: 0.10.0
libtpu: 0.0.40
codegen_flags: <defaults>
</compile_context>

<pallas_src>
import functools

import jax
import jax.numpy as jnp
from jax.experimental import pallas as pl
from jax.experimental.pallas import tpu as pltpu


_NEG_BIG = -1e30  # "minus infinity" for padded vocab columns (avoids inf/nan math)


def _round_up(x, m):
    return (x + m - 1) // m * m


def _vmem_budget_bytes():
    """Generation-aware VMEM budget with headroom for Mosaic internal scratch."""
    try:
        cap = int(pltpu.get_tpu_info().vmem_capacity_bytes)
    except Exception:
        cap = 64 * 1024 * 1024  # safe default (v7x-sized)
    # ~48 MiB on v7x (64 MiB phys), ~96 MiB on v5e/v6e (128 MiB phys).
    return min(cap * 3 // 4, 100 * 1024 * 1024)


def _is_multicore_chip():
    """Best-effort detection of chips with 2 TensorCores (v7x)."""
    try:
        kind = jax.devices()[0].device_kind.lower()
    except Exception:
        return False
    return "v7" in kind


# ---------------------------------------------------------------------------
# Kernels
# ---------------------------------------------------------------------------

def _mlm_kernel_single(x_ref, w_ref, b_ref, o_ref, m_ref, l_ref):
    """Single pass: grid (row tiles [parallel], vocab tiles [arbitrary]).

    The (tm, vocab_p) f32 output slab is VMEM-resident across the vocab sweep;
    raw logits are written in place per vocab tile and normalized once at the
    last tile -> one matmul and one HBM write per logits element.
    """
    j = pl.program_id(1)
    nv = pl.num_programs(1)

    @pl.when(j == 0)
    def _init():
        m_ref[...] = jnp.full(m_ref.shape, -jnp.inf, dtype=m_ref.dtype)
        l_ref[...] = jnp.zeros(l_ref.shape, dtype=l_ref.dtype)

    # (tm, tn) logits tile: bf16 operands on the MXU, f32 accumulation.
    s = jnp.dot(x_ref[...], w_ref[...], preferred_element_type=jnp.float32)
    s = s + b_ref[...]
    tn = s.shape[-1]

    # Online log-sum-exp statistics.
    m_prev = m_ref[...]
    m_new = jnp.maximum(m_prev, jnp.max(s, axis=-1, keepdims=True))
    l_ref[...] = (l_ref[...] * jnp.exp(m_prev - m_new)
                  + jnp.sum(jnp.exp(s - m_new), axis=-1, keepdims=True))
    m_ref[...] = m_new

    # Raw logits into the VMEM-resident output slab (no HBM traffic yet).
    col = pl.multiple_of(j * tn, 128)
    o_ref[:, pl.ds(col, tn)] = s.astype(o_ref.dtype)

    @pl.when(j == nv - 1)
    def _finalize():
        lse = m_ref[...] + jnp.log(l_ref[...])
        o_ref[...] = (o_ref[...].astype(jnp.float32) - lse).astype(o_ref.dtype)


def _mlm_kernel_two_pass(x_ref, w_ref, b_ref, o_ref, m_ref, l_ref, lse_ref):
    """Two-pass fallback: grid (row tiles [parallel], phase {0,1}, vocab tiles).

    Phase 0 only accumulates the online LSE stats (no output store, and the
    output index_map keeps phase 0 pinned to one block, so no HBM writeback);
    phase 1 recomputes each logits tile and emits logits - lse once.
    """
    p = pl.program_id(1)
    j = pl.program_id(2)

    s = jnp.dot(x_ref[...], w_ref[...], preferred_element_type=jnp.float32)
    s = s + b_ref[...]

    @pl.when(jnp.logical_and(p == 0, j == 0))
    def _init():
        m_ref[...] = jnp.full(m_ref.shape, -jnp.inf, dtype=m_ref.dtype)
        l_ref[...] = jnp.zeros(l_ref.shape, dtype=l_ref.dtype)

    @pl.when(p == 0)
    def _accumulate():
        m_prev = m_ref[...]
        m_new = jnp.maximum(m_prev, jnp.max(s, axis=-1, keepdims=True))
        l_ref[...] = (l_ref[...] * jnp.exp(m_prev - m_new)
                      + jnp.sum(jnp.exp(s - m_new), axis=-1, keepdims=True))
        m_ref[...] = m_new
        # No o_ref store here: phase 1 is the only writer of the output.

    @pl.when(jnp.logical_and(p == 1, j == 0))
    def _lse_once_per_row_tile():
        lse_ref[...] = m_ref[...] + jnp.log(l_ref[...])

    @pl.when(p == 1)
    def _emit():
        o_ref[...] = (s - lse_ref[...]).astype(o_ref.dtype)


# ---------------------------------------------------------------------------
# Wrappers
# ---------------------------------------------------------------------------

def prepare_mlm_params(weight_t, bias, *, tn=1024):
    """Pad + bf16-cast the projection weight and pad the bias ONCE.

    Hoisted out of the per-call path so the full f32 weight is not re-read and
    re-written to HBM on every forward call.
    weight_t: (hidden, vocab) f32 (nn.Linear weight, pre-transposed).
    bias:     (vocab,) f32.
    """
    h, vocab = weight_t.shape
    tn_eff = min(tn, _round_up(vocab, 128))
    vocab_p = _round_up(vocab, tn_eff)
    w2 = jnp.pad(weight_t, ((0, 0), (0, vocab_p - vocab))).astype(jnp.bfloat16)
    # Padded vocab columns get a huge negative bias -> never influence max/sum-exp.
    b2 = jnp.pad(bias.astype(jnp.float32), (0, vocab_p - vocab),
                 constant_values=_NEG_BIG).reshape(1, vocab_p)
    return w2, b2, vocab


@functools.partial(jax.jit, static_argnames=("vocab", "tm", "tn", "single_pass"))
def mlm_forward(x, w_padded, bias_padded, *, vocab, tm=512, tn=1024,
                single_pass=None):
    """x: (b, t, h) f32.  w_padded: (h, vocab_p) bf16.  bias_padded: (1, vocab_p) f32."""
    b, t, h = x.shape
    vocab_p = w_padded.shape[1]
    rows = b * t

    tm_eff = min(tm, _round_up(rows, 16))
    tn_eff = min(tn, vocab_p)
    assert vocab_p % tn_eff == 0, "use the same tn for prepare_mlm_params and mlm_forward"
    rows_p = _round_up(rows, tm_eff)

    # v7x has 2 TensorCores; only the 'parallel' row axis is sharded across them,
    # so keep at least 2 row tiles when the problem allows it.
    if _is_multicore_chip():
        while tm_eff > 16 and rows_p // tm_eff < 2 and rows > tm_eff // 2:
            tm_eff //= 2
            rows_p = _round_up(rows, tm_eff)

    budget = _vmem_budget_bytes()

    # Decide single-pass vs two-pass: single-pass keeps a (tm, vocab_p) f32
    # output slab resident in VMEM (double-buffered across row tiles).
    if single_pass is None:
        single_pass = False
        tm_floor = min(256, tm_eff)
        tm_try = tm_eff
        while True:
            est = (2 * tm_try * h * 2          # x tile (bf16, double-buffered)
                   + 2 * h * tn_eff * 2        # weight slab (bf16)
                   + 2 * tn_eff * 4            # bias slab
                   + 2 * tm_try * vocab_p * 4  # resident output slab
                   + 3 * tm_try * 4)           # stats scratch
            if est <= int(0.85 * budget):
                single_pass = True
                tm_eff = tm_try
                rows_p = _round_up(rows, tm_eff)
                break
            nxt = tm_try // 2
            if nxt < tm_floor or nxt % 16:
                break
            tm_try = nxt

    nr = rows_p // tm_eff
    nv = vocab_p // tn_eff

    x2 = x.reshape(rows, h)
    x2 = jnp.pad(x2, ((0, rows_p - rows), (0, 0))).astype(jnp.bfloat16)

    if single_pass:
        out2 = pl.pallas_call(
            _mlm_kernel_single,
            out_shape=jax.ShapeDtypeStruct((rows_p, vocab_p), jnp.float32),
            grid_spec=pltpu.PrefetchScalarGridSpec(
                num_scalar_prefetch=0,
                grid=(nr, nv),  # (row tiles, vocab tiles)
                in_specs=[
                    pl.BlockSpec((tm_eff, h), lambda i, j: (i, 0)),   # x row tile
                    pl.BlockSpec((h, tn_eff), lambda i, j: (0, j)),   # weight slab
                    pl.BlockSpec((1, tn_eff), lambda i, j: (0, j)),   # bias slab
                ],
                # Output slab stays VMEM-resident across the vocab sweep.
                out_specs=pl.BlockSpec((tm_eff, vocab_p), lambda i, j: (i, 0)),
                scratch_shapes=[
                    pltpu.VMEM((tm_eff, 1), jnp.float32),   # running row max
                    pltpu.VMEM((tm_eff, 1), jnp.float32),   # running sum-exp
                ],
            ),
            compiler_params=pltpu.CompilerParams(
                dimension_semantics=("parallel", "arbitrary"),
                vmem_limit_bytes=budget,
            ),
        )(x2, w_padded, bias_padded)
    else:
        out2 = pl.pallas_call(
            _mlm_kernel_two_pass,
            out_shape=jax.ShapeDtypeStruct((rows_p, vocab_p), jnp.float32),
            grid_spec=pltpu.PrefetchScalarGridSpec(
                num_scalar_prefetch=0,
                grid=(nr, 2, nv),  # (row tiles, phase, vocab tiles)
                in_specs=[
                    pl.BlockSpec((tm_eff, h), lambda i, p, j: (i, 0)),
                    pl.BlockSpec((h, tn_eff), lambda i, p, j: (0, j)),
                    pl.BlockSpec((1, tn_eff), lambda i, p, j: (0, j)),
                ],
                # Phase 0 keeps hitting block (i, 0) -> no per-tile HBM writeback
                # of raw logits; phase 1 writes each (i, j) block exactly once.
                out_specs=pl.BlockSpec((tm_eff, tn_eff), lambda i, p, j: (i, j * p)),
                scratch_shapes=[
                    pltpu.VMEM((tm_eff, 1), jnp.float32),   # running row max
                    pltpu.VMEM((tm_eff, 1), jnp.float32),   # running sum-exp
                    pltpu.VMEM((tm_eff, 1), jnp.float32),   # lse (once per row tile)
                ],
            ),
            compiler_params=pltpu.CompilerParams(
                dimension_semantics=("parallel", "arbitrary", "arbitrary"),
                vmem_limit_bytes=budget,
            ),
        )(x2, w_padded, bias_padded)

    return out2[:rows, :vocab].reshape(b, t, vocab)


def masked_language_model(x, weight_t, bias, *, tm=512, tn=1024, single_pass=None):
    """Convenience wrapper matching the torch module's forward.

    In a hot loop prefer: w2, b2, vocab = prepare_mlm_params(...); mlm_forward(...).
    """
    w2, b2, vocab = prepare_mlm_params(weight_t, bias, tn=tn)
    return mlm_forward(x, w2, b2, vocab=vocab, tm=tm, tn=tn, single_pass=single_pass)


def _reference(x, weight_t, bias):
    # Matches the kernel's bf16-operand / f32-accumulate matmul.
    xb = x.astype(jnp.bfloat16).astype(jnp.float32)
    wb = weight_t.astype(jnp.bfloat16).astype(jnp.float32)
    logits = jnp.einsum("bth,hv->btv", xb, wb,
                        precision=jax.lax.Precision.HIGHEST) + bias
    return jax.nn.log_softmax(logits, axis=-1)


if __name__ == "__main__":
    # Small shapes consistent with the module's forward: (b, t, h) -> (b, t, vocab)
    b, t, hidden, vocab = 2, 8, 32, 128

    key = jax.random.PRNGKey(0)
    kx, kw, kb = jax.random.split(key, 3)

    x = jax.random.normal(kx, (b, t, hidden), dtype=jnp.float32)
    # Deterministic init mirroring nn.Linear(hidden, vocab): weight stored
    # pre-transposed as (hidden, vocab); bias (vocab,).
    bound = 1.0 / (hidden ** 0.5)
    weight_t = jax.random.uniform(
        kw, (hidden, vocab), dtype=jnp.float32, minval=-bound, maxval=bound
    )
    bias = jax.random.uniform(
        kb, (vocab,), dtype=jnp.float32, minval=-bound, maxval=bound
    )

    # Hoisted weight preparation (pad + bf16 cast) — done once, outside the hot path.
    w2, b2, vocab_sz = prepare_mlm_params(weight_t, bias, tn=1024)

    ref = _reference(x, weight_t, bias)

    # Exercise both execution plans: single-pass (VMEM-resident output slab) and
    # the two-pass online-LSE fallback (used when the vocab slab won't fit VMEM).
    for sp in (True, False):
        out = mlm_forward(x, w2, b2, vocab=vocab_sz, single_pass=sp)
        out = jax.block_until_ready(out)
        assert out.shape == (b, t, vocab)
        assert jnp.allclose(out, ref, atol=5e-4, rtol=5e-4), (
            "mismatch vs reference (single_pass=%s), max abs err = %s"
            % (sp, float(jnp.max(jnp.abs(out - ref)))))

    print("KERNEL_OK")
</pallas_src>

<mosaic_0001>
module attributes {stable_mosaic.version = 11 : i64} {
  func.func @_mlm_kernel_single(%arg0: i32, %arg1: i32, %arg2: memref<16x32xbf16, #tpu.memory_space<vmem>>, %arg3: memref<32x128xbf16, #tpu.memory_space<vmem>>, %arg4: memref<1x128xf32, #tpu.memory_space<vmem>>, %arg5: memref<16x128xf32, #tpu.memory_space<vmem>>, %arg6: memref<16x1xf32, #tpu.memory_space<vmem>>, %arg7: memref<16x1xf32, #tpu.memory_space<vmem>>) attributes {dimension_semantics = [#tpu.dimension_semantics<parallel>, #tpu.dimension_semantics<arbitrary>], iteration_bounds = array<i64: 1, 1>, scalar_prefetch = 0 : i64, scratch_operands = 2 : i64, tpu.core_type = #tpu.core_type<tc>, window_params = [{transform_indices = @transform_0, window_bounds = array<i64: 16, 32>}, {transform_indices = @transform_1, window_bounds = array<i64: 32, 128>}, {transform_indices = @transform_2, window_bounds = array<i64: 1, 128>}, {transform_indices = @transform_3, window_bounds = array<i64: 16, 128>}]} {
    %c0_i32 = arith.constant 0 : i32
    %0 = arith.cmpi eq, %arg1, %c0_i32 : i32
    %1 = arith.extui %0 : i1 to i32
    %c0_i32_0 = arith.constant 0 : i32
    %2 = arith.cmpi ne, %1, %c0_i32_0 : i32
    scf.if %2 {
      %cst_19 = arith.constant 0xFF800000 : f32
      %32 = vector.broadcast %cst_19 : f32 to vector<16x1xf32>
      %c0_20 = arith.constant 0 : index
      %c0_21 = arith.constant 0 : index
      %33 = vector.load %arg6[%c0_20, %c0_21] : memref<16x1xf32, #tpu.memory_space<vmem>>, vector<16x1xf32>
      tpu.vector_store %arg6[%c0_20, %c0_21], %32 {strides = array<i32>} : memref<16x1xf32, #tpu.memory_space<vmem>>, vector<16x1xf32>,
      %cst_22 = arith.constant 0.000000e+00 : f32
      %34 = vector.broadcast %cst_22 : f32 to vector<16x1xf32>
      %c0_23 = arith.constant 0 : index
      %c0_24 = arith.constant 0 : index
      %35 = vector.load %arg7[%c0_23, %c0_24] : memref<16x1xf32, #tpu.memory_space<vmem>>, vector<16x1xf32>
      tpu.vector_store %arg7[%c0_23, %c0_24], %34 {strides = array<i32>} : memref<16x1xf32, #tpu.memory_space<vmem>>, vector<16x1xf32>,
    } else {
    }
    %c0 = arith.constant 0 : index
    %c0_1 = arith.constant 0 : index
    %3 = vector.load %arg2[%c0, %c0_1] : memref<16x32xbf16, #tpu.memory_space<vmem>>, vector<16x32xbf16>
    %c0_2 = arith.constant 0 : index
    %c0_3 = arith.constant 0 : index
    %4 = vector.load %arg3[%c0_2, %c0_3] : memref<32x128xbf16, #tpu.memory_space<vmem>>, vector<32x128xbf16>
    %cst = arith.constant dense<0.000000e+00> : vector<16x128xf32>
    %5 = tpu.matmul %3, %4, %cst {dimension_numbers = #tpu.dot_dimension_numbers<[1], [0], [0], [1], [0, 0, 1, 1], [], []>} : vector<16x32xbf16>, vector<32x128xbf16>, vector<16x128xf32> -> vector<16x128xf32>
    %c0_4 = arith.constant 0 : index
    %c0_5 = arith.constant 0 : index
    %6 = vector.load %arg4[%c0_4, %c0_5] : memref<1x128xf32, #tpu.memory_space<vmem>>, vector<1x128xf32>
    %7 = vector.broadcast %6 : vector<1x128xf32> to vector<16x128xf32>
    %8 = arith.addf %5, %7 : vector<16x128xf32>
    %c0_6 = arith.constant 0 : index
    %c0_7 = arith.constant 0 : index
    %9 = vector.load %arg6[%c0_6, %c0_7] : memref<16x1xf32, #tpu.memory_space<vmem>>, vector<16x1xf32>
    %cst_8 = arith.constant dense<0xFF800000> : vector<16xf32>
    %10 = vector.multi_reduction <maximumf>, %8, %cst_8 [1] : vector<16x128xf32> to vector<16xf32>
    %11 = vector.shape_cast %10 : vector<16xf32> to vector<16x1xf32>
    %12 = arith.maximumf %9, %11 : vector<16x1xf32>
    %c0_9 = arith.constant 0 : index
    %c0_10 = arith.constant 0 : index
    %13 = vector.load %arg7[%c0_9, %c0_10] : memref<16x1xf32, #tpu.memory_space<vmem>>, vector<16x1xf32>
    %14 = arith.subf %9, %12 : vector<16x1xf32>
    %15 = math.exp %14 : vector<16x1xf32>
    %16 = arith.mulf %13, %15 : vector<16x1xf32>
    %17 = vector.broadcast %12 : vector<16x1xf32> to vector<16x128xf32>
    %18 = arith.subf %8, %17 : vector<16x128xf32>
    %19 = math.exp %18 : vector<16x128xf32>
    %cst_11 = arith.constant dense<0.000000e+00> : vector<16xf32>
    %20 = vector.multi_reduction <add>, %19, %cst_11 [1] : vector<16x128xf32> to vector<16xf32>
    %21 = vector.shape_cast %20 : vector<16xf32> to vector<16x1xf32>
    %22 = arith.addf %16, %21 : vector<16x1xf32>
    %c0_12 = arith.constant 0 : index
    %c0_13 = arith.constant 0 : index
    %23 = vector.load %arg7[%c0_12, %c0_13] : memref<16x1xf32, #tpu.memory_space<vmem>>, vector<16x1xf32>
    tpu.vector_store %arg7[%c0_12, %c0_13], %22 {strides = array<i32>} : memref<16x1xf32, #tpu.memory_space<vmem>>, vector<16x1xf32>,
    %c0_14 = arith.constant 0 : index
    %c0_15 = arith.constant 0 : index
    %24 = vector.load %arg6[%c0_14, %c0_15] : memref<16x1xf32, #tpu.memory_space<vmem>>, vector<16x1xf32>
    tpu.vector_store %arg6[%c0_14, %c0_15], %12 {strides = array<i32>} : memref<16x1xf32, #tpu.memory_space<vmem>>, vector<16x1xf32>,
    %c128_i32 = arith.constant 128 : i32
    %25 = arith.muli %arg1, %c128_i32 : i32
    %26 = tpu.assume_multiple %25, 128 : i32
    %c0_16 = arith.constant 0 : index
    %27 = arith.index_cast %26 : i32 to index
    %28 = vector.load %arg5[%c0_16, %27] : memref<16x128xf32, #tpu.memory_space<vmem>>, vector<16x128xf32>
    tpu.vector_store %arg5[%c0_16, %27], %8 {strides = array<i32>} : memref<16x128xf32, #tpu.memory_space<vmem>>, vector<16x128xf32>,
    %c0_i32_17 = arith.constant 0 : i32
    %29 = arith.cmpi eq, %arg1, %c0_i32_17 : i32
    %30 = arith.extui %29 : i1 to i32
    %c0_i32_18 = arith.constant 0 : i32
    %31 = arith.cmpi ne, %30, %c0_i32_18 : i32
    scf.if %31 {
      %c0_19 = arith.constant 0 : index
      %c0_20 = arith.constant 0 : index
      %32 = vector.load %arg6[%c0_19, %c0_20] : memref<16x1xf32, #tpu.memory_space<vmem>>, vector<16x1xf32>
      %c0_21 = arith.constant 0 : index
      %c0_22 = arith.constant 0 : index
      %33 = vector.load %arg7[%c0_21, %c0_22] : memref<16x1xf32, #tpu.memory_space<vmem>>, vector<16x1xf32>
      %34 = math.log %33 : vector<16x1xf32>
      %35 = arith.addf %32, %34 : vector<16x1xf32>
      %c0_23 = arith.constant 0 : index
      %c0_24 = arith.constant 0 : index
      %36 = vector.load %arg5[%c0_23, %c0_24] : memref<16x128xf32, #tpu.memory_space<vmem>>, vector<16x128xf32>
      %37 = vector.broadcast %35 : vector<16x1xf32> to vector<16x128xf32>
      %38 = arith.subf %36, %37 : vector<16x128xf32>
      %c0_25 = arith.constant 0 : index
      %c0_26 = arith.constant 0 : index
      %39 = vector.load %arg5[%c0_25, %c0_26] : memref<16x128xf32, #tpu.memory_space<vmem>>, vector<16x128xf32>
      tpu.vector_store %arg5[%c0_25, %c0_26], %38 {strides = array<i32>} : memref<16x128xf32, #tpu.memory_space<vmem>>, vector<16x128xf32>,
    } else {
    }
    return
  }
  func.func @transform_0(%arg0: i32, %arg1: i32) -> (i32, i32) {
    %c0_i32 = arith.constant 0 : i32
    %c0_i32_0 = arith.constant 0 : i32
    return %arg0, %c0_i32 : i32, i32
  }
  func.func @transform_1(%arg0: i32, %arg1: i32) -> (i32, i32) {
    %c0_i32 = arith.constant 0 : i32
    %c0_i32_0 = arith.constant 0 : i32
    return %c0_i32, %arg1 : i32, i32
  }
  func.func @transform_2(%arg0: i32, %arg1: i32) -> (i32, i32) {
    %c0_i32 = arith.constant 0 : i32
    %c0_i32_0 = arith.constant 0 : i32
    return %c0_i32, %arg1 : i32, i32
  }
  func.func @transform_3(%arg0: i32, %arg1: i32) -> (i32, i32) {
    %c0_i32 = arith.constant 0 : i32
    %c0_i32_0 = arith.constant 0 : i32
    return %arg0, %c0_i32 : i32, i32
  }
}

</mosaic_0001>

<bundles_post_ra>
// kernel: mlm_forward.1
= control target key start
LH: loop header
LB: loop body
LE: loop exit
PB: predicated region body
PF: predicated region fallthrough
CT: control target
= control target key end

     0   :  { %v261_v1 = vmov 0.0   ;;  %vm262_vm0 = vmmov 0   ;;  %s330_s0 = inlined_call_operand.vmem [shape: bf16[16,32], index: 0, kind: input, shape index: {}]   ;;  %s331_s1 = inlined_call_operand.vmem [shape: bf16[32,128], index: 1, kind: input, shape index: {}]   ;;  %s332_s2 = inlined_call_operand.vmem [shape: f32[1,128], index: 2, kind: input, shape index: {}]   ;;  %s333_s3 = inlined_call_operand.hbm [shape: f32[16,128], index: 3, kind: output, shape index: {}]  }
   0x1   :  { %v222_v0 = vld [vmem:[%s331_s1] sm:$0xff]   ;;  %205 = vmatprep.subr.bf16.mxu0 %v261_v1  ;;  %v223_v2 = vld [vmem:[%s331_s1 + $0x8] sm:$0xff]   ;;  %209 = vmatprep.mubr.msk.bf16.mxu0 %vm262_vm0, %v261_v1 }
   0x2   :  { %206 = vmatpush3.bf16.msra.mxu0 %v222_v0 }
   0x3   :  { %207 = vmatprep.subr.bf16.mxu0 %v261_v1 }
   0x4   :  { %8 = vsyncpa [#allocation5], 0  ;;  %v224_v3 = vld [vmem:[%s330_s0] sm:$0xff]   ;;  %vm55_vm1 = vcmask 261120   ;;  %vm20_vm2 = vcmask 7168   ;;  %v263_v11 = vmov -inf  }
   0x5   :  { %v197_v4 = vld [vmem:[%s332_s2] ss:$0 sm:$0xff]  ;;  %21 = vst.msk [vmem:[#allocation2] sm:$0xff] %vm20_vm2, %v263_v11  ;;  %22 = vst.msk [vmem:[#allocation2 + $0x8] sm:$0xff] %vm20_vm2, %v263_v11  ;;  %v264_v12 = vmov 0   ;;  %s265_s0 = smov [#allocation4]  }
   0x6   :  { %208 = vmatpush3.bf16.msra.mxu0 %v223_v2  ;;  %23 = vst.msk [vmem:[#allocation3] sm:$0xff] %vm20_vm2, %v261_v1  ;;  %24 = vst.msk [vmem:[#allocation3 + $0x8] sm:$0xff] %vm20_vm2, %v261_v1  ;;  %220 = vset.pattern.permute.xlu1 %v264_v12  ;;  %s185_s1 = sshll.u32 %s265_s0, 4  ;;  %s186_s1 = int_to_ptr.vmem [resolvable:$true] %s185_s1 }
   0x7   :  { %221 = vset.pattern.permute.xlu0 %v264_v12  ;;  %s237_s2 = scalar_lea.vmem %s186_s1, 256  ;;  %p242_p1 = scmp.lt.s32.totalorder %s186_s1, %s186_s1 }
   0x8   :  { %p238_p0 = scmp.ne.s32.totalorder %s186_s1, %s237_s2  ;;  %p243_p2 = scmp.lt.s32.totalorder %s237_s2, %s237_s2 }
   0x9   :  { %210 = vmatmul.mubr.msk.bf16.vlgmr.msra.gmra.mrb[0].mxu0 %vm55_vm1, %v224_v3 }
   0xa   :  { %p244_p3 = por %p243_p2, %p242_p1 }
   0xc   :  { %v100_v13 = vld [vmem:[#allocation2] sm:$0xff]  ;;  %v101_v16 = vld [vmem:[#allocation2 + $0x8] sm:$0xff]  ;;  %p245_p4 = pnand %p244_p3, %p238_p0 }
   0xd   :  { %v108_v32 = vld [vmem:[#allocation3] sm:$0xff]  ;;  %v109_v36 = vld [vmem:[#allocation3 + $0x8] sm:$0xff] }
  0xdc   :  { %v93_v5 = vpop.f32.mrb[0].mxu0 }
  0xdd   :  { %v300_v6 = vadd.f32 %v197_v4, %v93_v5  ;;  %v211_v7 = vpop.f32.mrb[1].mxu0 }
  0xde   :  { %v96_v8 = vpop.f32.mrb[2].mxu0 }
  0xdf   :  { %102 = vmax.xlane.f32.xlu0 %v300_v6  ;;  %v212_v9 = vpop.f32.mrb[3].mxu0  ;;  %v303_v10 = vadd.f32 %v197_v4, %v96_v8 }
  0xe3   :  { %104 = vmax.xlane.f32.xlu0 %v303_v10 }
 0x16c   :  { %v103_v14 = vpop.xlane.xlu0 %102 }
 0x16d   :  { %v106_v15 = vmax.f32 %v100_v13, %v103_v14 }
 0x16f   :  { %v110_v17 = vsub.f32 %v100_v13, %v106_v15  ;;  %143 = vst.msk [vmem:[#allocation2] sm:$0xff] %vm20_vm2, %v106_v15  ;;  %120 = vperm.xlu1 %220, %v106_v15  }
 0x170   :  { %v105_v18 = vpop.xlane.xlu0 %104 }
 0x171   :  { %v107_v19 = vmax.f32 %v101_v16, %v105_v18  ;;  %v112_v29 = vmul.f32 1.442695, %v110_v17 }
 0x173   :  { %v111_v20 = vsub.f32 %v101_v16, %v107_v19  ;;  %144 = vst.msk [vmem:[#allocation2 + $0x8] sm:$0xff] %vm20_vm2, %v107_v19  ;;  %125 = vperm.xlu1 %220, %v107_v19  }
 0x175   :  { %v114_v30 = vmul.f32 1.442695, %v111_v20 }
 0x176   :  { %v154_v45 = vld [vmem:[#allocation2] sm:$0xff] }
 0x17a   :  { %v155_v49 = vld [vmem:[#allocation2 + $0x8] sm:$0xff] }
 0x1ee   :  { %v121_v21 = vpop.permute.xlu1 %120 }
 0x1ef   :  { %v128_v22 = vsub.f32 %v300_v6, %v121_v21 }
 0x1f1   :  { %v130_v23 = vmul.f32 1.442695, %v128_v22 }
 0x1f2   :  { %v126_v24 = vpop.permute.xlu1 %125 }
 0x1f3   :  { %225 = vpow2.f32 %v130_v23  ;;  %v129_v25 = vsub.f32 %v303_v10, %v126_v24 }
 0x1f5   :  { %v132_v26 = vmul.f32 1.442695, %v129_v25 }
 0x1f7   :  { %227 = vpow2.f32 %v132_v26 }
 0x1f8   :  { %229 = vpow2.f32 %v112_v29 }
 0x1f9   :  { %231 = vpow2.f32 %v114_v30 }
 0x1fd   :  { %v226_v27 = vpop.eup %225 }
 0x1fe   :  { %134 = vadd.xlane.f32.xlu0 %v226_v27 }
 0x201   :  { %v228_v28 = vpop.eup %227 }
 0x202   :  { %136 = vadd.xlane.f32.xlu1 %v228_v28  ;;  %v230_v31 = vpop.eup %229 }
 0x203   :  { %v116_v33 = vmul.f32 %v230_v31, %v108_v32  ;;  %v232_v34 = vpop.eup %231 }
 0x204   :  { %v117_v38 = vmul.f32 %v232_v34, %v109_v36 }
 0x28b   :  { %v135_v35 = vpop.xlane.xlu0 %134 }
 0x28c   :  { %v138_v37 = vadd.f32 %v135_v35, %v116_v33 }
 0x28e   :  { %141 = vst.msk [vmem:[#allocation3] sm:$0xff] %vm20_vm2, %v138_v37 }
 0x28f   :  { %v137_v39 = vpop.xlane.xlu1 %136 }
 0x290   :  { %v139_v40 = vadd.f32 %v137_v39, %v117_v38 }
 0x292   :  { %142 = vst.msk [vmem:[#allocation3 + $0x8] sm:$0xff] %vm20_vm2, %v139_v40 }
 0x295   :  { %v156_v41 = vld [vmem:[#allocation3] sm:$0xff] }
 0x296   :  { %233 = vlog2.f32 %v156_v41 }
 0x299   :  { %v157_v42 = vld [vmem:[#allocation3 + $0x8] sm:$0xff] }
 0x29a   :  { %235 = vlog2.f32 %v157_v42 }
 0x2a0   :  { %v234_v43 = vpop.eup %233 }
 0x2a1   :  { %v159_v44 = vmul.f32 0.6931472, %v234_v43 }
 0x2a3   :  { %v162_v46 = vadd.f32 %v159_v44, %v154_v45 }
 0x2a4   :  { %v236_v47 = vpop.eup %235 }
 0x2a5   :  { %168 = vperm.xlu0 %221, %v162_v46   ;;  %v161_v48 = vmul.f32 0.6931472, %v236_v47 }
 0x2a7   :  { %v163_v50 = vadd.f32 %v161_v48, %v155_v49 }
 0x2a9   :  { %173 = vperm.xlu1 %220, %v163_v50  }
 0x324   :  { %v169_v51 = vpop.permute.xlu0 %168 }
 0x325   :  { %v176_v52 = vsub.f32 %v300_v6, %v169_v51 }
 0x327   :  { %178 = vst [vmem:[#allocation4] sm:$0xff] %v176_v52 }
 0x328   :  { %v174_v53 = vpop.permute.xlu1 %173 }
 0x329   :  { %v177_v54 = vsub.f32 %v303_v10, %v174_v53 }
 0x32b   :  { %179 = vst [vmem:[#allocation4 + $0x8] sm:$0xff] %v177_v54 }
 0x32c   :  { %248 = shalt.err (!%p245_p4)
}
 0x32d   :  { %s249_s22 = scalar_lea.hbm %s333_s3, 256 }
 0x32e   :  { %p250_p5 = scmp.ne.s32.totalorder %s333_s3, %s249_s22  ;;  %p253_p6 = scmp.lt.u32.totalorder %s249_s22, %s333_s3 }
 0x330   :  { %p255_p7 = pnand %p253_p6, %p250_p5 }
 0x332   :  { %258 = shalt.err (!%p255_p7)
}
 0x333   :  { %s266_s27 = smov 128   ;;  %s267_s28 = smov 8  }
 0x334   :  { %191 = dma.vmem_to_hbm [thread:$0]  %s186_s1, 256, %s333_s3, [#allocation5], %s266_s27, %s266_s27, %s267_s28  }
 0x335   :  { %259 = dma.done.wait [#allocation5], 256  }
 0x336   :  { %260 = vsyncadd [#allocation5], 4294967040 }
 0x337   :  { %195 = vsyncpa [#allocation5], 1 }

</bundles_post_ra>
